<compile_context>
chip_gen: v5e
topology: v5e:2x2
jax: 0.10.0
libtpu: 0.0.40
codegen_flags: <defaults>
</compile_context>

<pallas_src>
import jax
import jax.numpy as jnp
from jax.experimental import pallas as pl
from jax.experimental.pallas import tpu as pltpu

IN_FEATURES = 100
HIDDEN = 100
OUT_FEATURES = 10

# Lane-padded feature sizes (TPU vreg lane width = 128).
PAD_IN = 128
PAD_HID = 128
PAD_OUT = 128

# Max rows per grid step. Sized against v7x's smaller VMEM:
# (512 x 128) bf16/f32 tiles x a few double-buffers << 16 MiB.
MAX_TB = 512


def _round_up(n, m):
    return ((n + m - 1) // m) * m


def simple_module_kernel(x_ref, w1_ref, b1_ref, w2_ref, b2_ref, o_ref):
    # x_ref : (TB, 128)  bf16   (zero-padded cols 100..127)
    # w1_ref: (128, 128) bf16   (zero-padded rows/cols)
    # b1_ref: (1, 128)   f32
    # w2_ref: (128, 128) bf16   (zero-padded; only first 10 cols nonzero)
    # b2_ref: (1, 128)   f32
    # o_ref : (TB, 128)  f32    (only first 10 cols meaningful)
    x = x_ref[...]
    # Linear1 on the MXU (bf16 inputs, f32 accumulation).
    h = jnp.dot(x, w1_ref[...], preferred_element_type=jnp.float32)
    # Bias + ReLU + residual all in f32 on the VPU (v5e has no bf16 VPU path).
    h = jnp.maximum(h + b1_ref[...], 0.0)
    h = h + x.astype(jnp.float32)
    # Linear2 on the MXU (cast back to bf16 only for the matmul input).
    y = jnp.dot(h.astype(jnp.bfloat16), w2_ref[...],
                preferred_element_type=jnp.float32)
    o_ref[...] = (y + b2_ref[...]).astype(o_ref.dtype)


def simple_module_forward(x, w1, b1, w2, b2):
    """x: (B, 100) f32; w1: (100,100); b1: (100,); w2: (100,10); b2: (10,)."""
    B = x.shape[0]
    TB = min(MAX_TB, _round_up(B, 8))         # rows per grid step
    B_pad = _round_up(B, TB)                  # padded batch (multiple of TB)
    grid = (B_pad // TB,)

    # Zero-pad to lane-dense 128-wide shapes; cast HBM-heavy tensors to bf16.
    # (In a real model these padded/cast params would be precomputed once.)
    x_p = jnp.zeros((B_pad, PAD_IN), jnp.bfloat16)
    x_p = x_p.at[:B, :IN_FEATURES].set(x.astype(jnp.bfloat16))
    w1_p = jnp.zeros((PAD_IN, PAD_HID), jnp.bfloat16)
    w1_p = w1_p.at[:IN_FEATURES, :HIDDEN].set(w1.astype(jnp.bfloat16))
    b1_p = jnp.zeros((1, PAD_HID), jnp.float32).at[0, :HIDDEN].set(b1)
    w2_p = jnp.zeros((PAD_HID, PAD_OUT), jnp.bfloat16)
    w2_p = w2_p.at[:HIDDEN, :OUT_FEATURES].set(w2.astype(jnp.bfloat16))
    b2_p = jnp.zeros((1, PAD_OUT), jnp.float32).at[0, :OUT_FEATURES].set(b2)

    flops = 2 * B_pad * (PAD_IN * PAD_HID + PAD_HID * PAD_OUT)
    bytes_accessed = (x_p.size * 2 + w1_p.size * 2 + w2_p.size * 2
                      + b1_p.size * 4 + b2_p.size * 4 + B_pad * PAD_OUT * 4)

    vmem = pltpu.MemorySpace.VMEM
    out = pl.pallas_call(
        simple_module_kernel,
        out_shape=jax.ShapeDtypeStruct((B_pad, PAD_OUT), jnp.float32),
        grid=grid,
        in_specs=[
            # x: one batch tile per grid step
            pl.BlockSpec((TB, PAD_IN), lambda i: (i, 0), memory_space=vmem),
            # weights/biases: constant index_map -> stay VMEM-resident
            pl.BlockSpec((PAD_IN, PAD_HID), lambda i: (0, 0), memory_space=vmem),
            pl.BlockSpec((1, PAD_HID), lambda i: (0, 0), memory_space=vmem),
            pl.BlockSpec((PAD_HID, PAD_OUT), lambda i: (0, 0), memory_space=vmem),
            pl.BlockSpec((1, PAD_OUT), lambda i: (0, 0), memory_space=vmem),
        ],
        out_specs=pl.BlockSpec((TB, PAD_OUT), lambda i: (i, 0),
                               memory_space=vmem),
        compiler_params=pltpu.CompilerParams(
            dimension_semantics=("parallel",)),
        cost_estimate=pl.CostEstimate(flops=flops, transcendentals=0,
                                      bytes_accessed=bytes_accessed),
    )(x_p, w1_p, b1_p, w2_p, b2_p)

    # Slice padding away: valid batch rows and the 10 real output columns.
    return out[:B, :OUT_FEATURES]


def init_params(key):
    # Deterministic init mimicking PyTorch Linear's U(-1/sqrt(fan_in), +).
    k1, k2, k3, k4 = jax.random.split(key, 4)
    bound1 = 1.0 / jnp.sqrt(IN_FEATURES)
    bound2 = 1.0 / jnp.sqrt(HIDDEN)
    w1 = jax.random.uniform(k1, (IN_FEATURES, HIDDEN), jnp.float32,
                            minval=-bound1, maxval=bound1)
    b1 = jax.random.uniform(k2, (HIDDEN,), jnp.float32,
                            minval=-bound1, maxval=bound1)
    w2 = jax.random.uniform(k3, (HIDDEN, OUT_FEATURES), jnp.float32,
                            minval=-bound2, maxval=bound2)
    b2 = jax.random.uniform(k4, (OUT_FEATURES,), jnp.float32,
                            minval=-bound2, maxval=bound2)
    return w1, b1, w2, b2


def _reference(x, w1, b1, w2, b2):
    # Reference mimicking the kernel's bf16-input / f32-accumulate math.
    xq = x.astype(jnp.bfloat16).astype(jnp.float32)
    w1q = w1.astype(jnp.bfloat16).astype(jnp.float32)
    w2q = w2.astype(jnp.bfloat16).astype(jnp.float32)
    h = jnp.maximum(xq @ w1q + b1, 0.0) + xq
    h = h.astype(jnp.bfloat16).astype(jnp.float32)
    return h @ w2q + b2


if __name__ == "__main__":
    key = jax.random.PRNGKey(0)
    kx, kx2, kp = jax.random.split(key, 3)
    w1, b1, w2, b2 = init_params(kp)

    # Small demo batch.
    B = 8
    x = jax.random.normal(kx, (B, IN_FEATURES), jnp.float32)
    out = jax.block_until_ready(simple_module_forward(x, w1, b1, w2, b2))
    assert out.shape == (B, OUT_FEATURES)
    ref = _reference(x, w1, b1, w2, b2)
    assert jnp.allclose(out, ref, atol=2e-3, rtol=2e-3)

    # Second check: batch large/odd enough to exercise the multi-step grid
    # (TB=512, batch padded to a multiple of TB) and the batch-padding path.
    B2 = 600
    x2 = jax.random.normal(kx2, (B2, IN_FEATURES), jnp.float32)
    out2 = jax.block_until_ready(simple_module_forward(x2, w1, b1, w2, b2))
    assert out2.shape == (B2, OUT_FEATURES)
    ref2 = _reference(x2, w1, b1, w2, b2)
    assert jnp.allclose(out2, ref2, atol=2e-3, rtol=2e-3)

    print("KERNEL_OK")
</pallas_src>

<mosaic_0001>
module attributes {stable_mosaic.version = 11 : i64} {
  func.func @simple_module_kernel(%arg0: i32, %arg1: memref<8x128xbf16, #tpu.memory_space<vmem>>, %arg2: memref<128x128xbf16, #tpu.memory_space<vmem>>, %arg3: memref<1x128xf32, #tpu.memory_space<vmem>>, %arg4: memref<128x128xbf16, #tpu.memory_space<vmem>>, %arg5: memref<1x128xf32, #tpu.memory_space<vmem>>, %arg6: memref<8x128xf32, #tpu.memory_space<vmem>>) attributes {dimension_semantics = [#tpu.dimension_semantics<parallel>], iteration_bounds = array<i64: 1>, scalar_prefetch = 0 : i64, scratch_operands = 0 : i64, tpu.core_type = #tpu.core_type<tc>, window_params = [{transform_indices = @transform_0, window_bounds = array<i64: 8, 128>}, {pipeline_mode = #tpu.pipeline_mode<synchronous>, transform_indices = @transform_1, window_bounds = array<i64: 128, 128>}, {pipeline_mode = #tpu.pipeline_mode<synchronous>, transform_indices = @transform_2, window_bounds = array<i64: 1, 128>}, {pipeline_mode = #tpu.pipeline_mode<synchronous>, transform_indices = @transform_3, window_bounds = array<i64: 128, 128>}, {pipeline_mode = #tpu.pipeline_mode<synchronous>, transform_indices = @transform_4, window_bounds = array<i64: 1, 128>}, {transform_indices = @transform_5, window_bounds = array<i64: 8, 128>}]} {
    %c0 = arith.constant 0 : index
    %c0_0 = arith.constant 0 : index
    %0 = vector.load %arg1[%c0, %c0_0] : memref<8x128xbf16, #tpu.memory_space<vmem>>, vector<8x128xbf16>
    %c0_1 = arith.constant 0 : index
    %c0_2 = arith.constant 0 : index
    %1 = vector.load %arg2[%c0_1, %c0_2] : memref<128x128xbf16, #tpu.memory_space<vmem>>, vector<128x128xbf16>
    %cst = arith.constant dense<0.000000e+00> : vector<8x128xf32>
    %2 = tpu.matmul %0, %1, %cst {dimension_numbers = #tpu.dot_dimension_numbers<[1], [0], [0], [1], [0, 0, 1, 1], [], []>} : vector<8x128xbf16>, vector<128x128xbf16>, vector<8x128xf32> -> vector<8x128xf32>
    %c0_3 = arith.constant 0 : index
    %c0_4 = arith.constant 0 : index
    %3 = vector.load %arg3[%c0_3, %c0_4] : memref<1x128xf32, #tpu.memory_space<vmem>>, vector<1x128xf32>
    %4 = vector.broadcast %3 : vector<1x128xf32> to vector<8x128xf32>
    %5 = arith.addf %2, %4 : vector<8x128xf32>
    %cst_5 = arith.constant 0.000000e+00 : f32
    %6 = vector.broadcast %cst_5 : f32 to vector<8x128xf32>
    %7 = arith.maximumf %5, %6 : vector<8x128xf32>
    %8 = arith.extf %0 : vector<8x128xbf16> to vector<8x128xf32>
    %9 = arith.addf %7, %8 : vector<8x128xf32>
    %10 = arith.truncf %9 : vector<8x128xf32> to vector<8x128xbf16>
    %c0_6 = arith.constant 0 : index
    %c0_7 = arith.constant 0 : index
    %11 = vector.load %arg4[%c0_6, %c0_7] : memref<128x128xbf16, #tpu.memory_space<vmem>>, vector<128x128xbf16>
    %cst_8 = arith.constant dense<0.000000e+00> : vector<8x128xf32>
    %12 = tpu.matmul %10, %11, %cst_8 {dimension_numbers = #tpu.dot_dimension_numbers<[1], [0], [0], [1], [0, 0, 1, 1], [], []>} : vector<8x128xbf16>, vector<128x128xbf16>, vector<8x128xf32> -> vector<8x128xf32>
    %c0_9 = arith.constant 0 : index
    %c0_10 = arith.constant 0 : index
    %13 = vector.load %arg5[%c0_9, %c0_10] : memref<1x128xf32, #tpu.memory_space<vmem>>, vector<1x128xf32>
    %14 = vector.broadcast %13 : vector<1x128xf32> to vector<8x128xf32>
    %15 = arith.addf %12, %14 : vector<8x128xf32>
    %c0_11 = arith.constant 0 : index
    %c0_12 = arith.constant 0 : index
    %16 = vector.load %arg6[%c0_11, %c0_12] : memref<8x128xf32, #tpu.memory_space<vmem>>, vector<8x128xf32>
    tpu.vector_store %arg6[%c0_11, %c0_12], %15 {strides = array<i32>} : memref<8x128xf32, #tpu.memory_space<vmem>>, vector<8x128xf32>,
    return
  }
  func.func @transform_0(%arg0: i32) -> (i32, i32) {
    %c0_i32 = arith.constant 0 : i32
    %c0_i32_0 = arith.constant 0 : i32
    return %arg0, %c0_i32 : i32, i32
  }
  func.func @transform_1(%arg0: i32) -> (i32, i32) {
    %c0_i32 = arith.constant 0 : i32
    %c0_i32_0 = arith.constant 0 : i32
    %c0_i32_1 = arith.constant 0 : i32
    return %c0_i32, %c0_i32_0 : i32, i32
  }
  func.func @transform_2(%arg0: i32) -> (i32, i32) {
    %c0_i32 = arith.constant 0 : i32
    %c0_i32_0 = arith.constant 0 : i32
    %c0_i32_1 = arith.constant 0 : i32
    return %c0_i32, %c0_i32_0 : i32, i32
  }
  func.func @transform_3(%arg0: i32) -> (i32, i32) {
    %c0_i32 = arith.constant 0 : i32
    %c0_i32_0 = arith.constant 0 : i32
    %c0_i32_1 = arith.constant 0 : i32
    return %c0_i32, %c0_i32_0 : i32, i32
  }
  func.func @transform_4(%arg0: i32) -> (i32, i32) {
    %c0_i32 = arith.constant 0 : i32
    %c0_i32_0 = arith.constant 0 : i32
    %c0_i32_1 = arith.constant 0 : i32
    return %c0_i32, %c0_i32_0 : i32, i32
  }
  func.func @transform_5(%arg0: i32) -> (i32, i32) {
    %c0_i32 = arith.constant 0 : i32
    %c0_i32_0 = arith.constant 0 : i32
    return %arg0, %c0_i32 : i32, i32
  }
}

</mosaic_0001>

<bundles_post_ra>
// kernel: tpu_custom_call.1
= control target key start
LH: loop header
LB: loop body
LE: loop exit
PB: predicated region body
PF: predicated region fallthrough
CT: control target
= control target key end

     0   :  { %10 = vsyncpa [#allocation3], 0  ;;  %s496_s0 = inlined_call_operand.hbm [shape: bf16[8,128], index: 0, kind: input, shape index: {}]   ;;  %s497_s1 = inlined_call_operand.hbm [shape: bf16[128,128], index: 1, kind: input, shape index: {}]   ;;  %s498_s2 = inlined_call_operand.vmem [shape: f32[1,128], index: 2, kind: input, shape index: {}]   ;;  %s499_s3 = inlined_call_operand.hbm [shape: bf16[128,128], index: 3, kind: input, shape index: {}]   ;;  %s500_s4 = inlined_call_operand.vmem [shape: f32[1,128], index: 4, kind: input, shape index: {}]   ;;  %s501_s5 = inlined_call_operand.hbm [shape: f32[8,128], index: 5, kind: output, shape index: {}]  }
   0x1   :  { %11 = vsyncpa [#allocation6], 0  ;;  %s28_s20 = sshll.u32 %s497_s1, 4  ;;  %s29_s20 = int_to_ptr.hbm [resolvable:$true] %s28_s20 }
   0x2   :  { %12 = vsyncpa [#allocation4], 0  ;;  %s442_s21 = smov [#allocation5]   ;;  %s18_s25 = sshll.u32 %s496_s0, 4  ;;  %s19_s25 = int_to_ptr.hbm [resolvable:$true] %s18_s25 }
   0x3   :  { %s30_s22 = sshll.u32 %s442_s21, 4  ;;  %s443_s26 = smov 64   ;;  %s31_s22 = int_to_ptr.vmem [resolvable:$true] %s30_s22 }
   0x4   :  { %s444_s27 = smov 4   ;;  %s445_s28 = smov [#allocation2]  }
   0x5   :  { %36 = dma.hbm_to_vmem [thread:$0]  %s29_s20, 1024, %s31_s22, [#allocation6], %s443_s26, %s443_s26, %s444_s27  }
   0x6   :  { %s20_s29 = sshll.u32 %s445_s28, 4  ;;  %s43_s7 = sshll.u32 %s499_s3, 4  ;;  %s21_s29 = int_to_ptr.vmem [resolvable:$true] %s20_s29  ;;  %s44_s7 = int_to_ptr.hbm [resolvable:$true] %s43_s7 }
   0x7   :  { %23 = dma.hbm_to_vmem [thread:$0]  %s19_s25, 64, %s21_s29, [#allocation3]  }
   0x8   :  { %s446_s1 = smov [#allocation7]  }
   0x9   :  { %s45_s8 = sshll.u32 %s446_s1, 4  ;;  %s46_s8 = int_to_ptr.vmem [resolvable:$true] %s45_s8 }
   0xa   :  { %51 = dma.hbm_to_vmem [thread:$0]  %s44_s7, 1024, %s46_s8, [#allocation6], %s443_s26, %s443_s26, %s444_s27  }
   0xb   :  { %436 = dma.done.wait [#allocation3], 64  }
   0xc   :  { %437 = vsyncadd [#allocation3], 4294967232 }
   0xd   :  { %438 = dma.done.wait [#allocation6], 2048  }
   0xe   :  { %439 = vsyncadd [#allocation6], 4294965248  ;;  %v323_v0 = vld [vmem:[#allocation5 + $0x38] sm:$0xff]  ;;  %v322_v1 = vld [vmem:[#allocation5 + $0x30] sm:$0xff]  ;;  %s447_s11 = smov [#allocation8]   ;;  %s241_s15 = sshll.u32 %s501_s5, 4  ;;  %s242_s15 = int_to_ptr.hbm [resolvable:$true] %s241_s15 }
   0xf   :  { %135 = vmatpush.bf16.msra.mxu0 %v323_v0  ;;  %v331_v2 = vld [vmem:[#allocation7 + $0x38] sm:$0xff]  ;;  %v330_v3 = vld [vmem:[#allocation7 + $0x30] sm:$0xff]  ;;  %v321_v4 = vld [vmem:[#allocation5 + $0x28] sm:$0xff]  ;;  %s239_s12 = sshll.u32 %s447_s11, 4  ;;  %s240_s12 = int_to_ptr.vmem [resolvable:$true] %s239_s12 }
  0x10   :  { %220 = vmatpush.bf16.msra.mxu1 %v331_v2  ;;  %v329_v5 = vld [vmem:[#allocation7 + $0x28] sm:$0xff]  ;;  %v320_v6 = vld [vmem:[#allocation5 + $0x20] sm:$0xff]  ;;  %v319_v8 = vld [vmem:[#allocation5 + $0x18] sm:$0xff] }
  0x11   :  { %v328_v7 = vld [vmem:[#allocation7 + $0x20] sm:$0xff]  ;;  %v327_v9 = vld [vmem:[#allocation7 + $0x18] sm:$0xff]  ;;  %v318_v10 = vld [vmem:[#allocation5 + $0x10] sm:$0xff] }
  0x12   :  { %v326_v11 = vld [vmem:[#allocation7 + $0x10] sm:$0xff]  ;;  %v317_v12 = vld [vmem:[#allocation5 + $0x8] sm:$0xff]  ;;  %v316_v13 = vld [vmem:[#allocation5] sm:$0xff] }
  0x13   :  { %136 = vmatpush.bf16.msra.mxu0 %v322_v1  ;;  %v66_v14 = vld [vmem:[#allocation2] sm:$0xf]  ;;  %v325_v15 = vld [vmem:[#allocation7 + $0x8] sm:$0xff]  ;;  %v324_v16 = vld [vmem:[#allocation7] sm:$0xff] }
  0x14   :  { %221 = vmatpush.bf16.msra.mxu1 %v330_v3  ;;  %v338_v17 = vld [vmem:[%s498_s2] ss:$0 sm:$0xff]  ;;  %v149_v19 = vunpack.c.l.bf16 %v66_v14 }
  0x15   :  { %v339_v25 = vld [vmem:[%s500_s4] ss:$0 sm:$0xff] }
  0x17   :  { %137 = vmatpush.bf16.msra.mxu0 %v321_v4 }
  0x18   :  { %222 = vmatpush.bf16.msra.mxu1 %v329_v5 }
  0x1b   :  { %138 = vmatpush.bf16.msra.mxu0 %v320_v6 }
  0x1c   :  { %223 = vmatpush.bf16.msra.mxu1 %v328_v7 }
  0x1f   :  { %139 = vmatpush.bf16.msra.mxu0 %v319_v8 }
  0x20   :  { %224 = vmatpush.bf16.msra.mxu1 %v327_v9 }
  0x23   :  { %140 = vmatpush.bf16.msra.mxu0 %v318_v10 }
  0x24   :  { %225 = vmatpush.bf16.msra.mxu1 %v326_v11 }
  0x27   :  { %141 = vmatpush.bf16.msra.mxu0 %v317_v12 }
  0x28   :  { %226 = vmatpush.bf16.msra.mxu1 %v325_v15 }
  0x2b   :  { %142 = vmatpush.bf16.msra.mxu0 %v316_v13 }
  0x2c   :  { %227 = vmatpush.bf16.msra.mxu1 %v324_v16 }
  0x2e   :  { %143 = vmatmul.bf16.vlgmr.msra.gmra.mxu0 %v66_v14 }
  0xab   :  { %v144_v18 = vpop.f32.mrf.mxu0 }
  0xac   :  { %v145_v20 = vadd.f32 %v338_v17, %v144_v18 }
  0xae   :  { %v148_v21 = vmax.f32 %v145_v20, 0.0 }
  0xb0   :  { %v150_v22 = vadd.f32 %v149_v19, %v148_v21 }
  0xb2   :  { %v151_v23 = vpack.c.bf16 %v150_v22, %v150_v22 }
  0xb3   :  { %v146_v24 = vpop.f32.mrf.mxu0 }
  0xb4   :  { %228 = vmatmul.bf16.vlgmr.msra.gmra.mxu1 %v151_v23 }
 0x131   :  { %v229_v26 = vpop.f32.mrf.mxu1 }
 0x132   :  { %v230_v27 = vadd.f32 %v339_v25, %v229_v26 }
 0x134   :  { %233 = vst [vmem:[#allocation8] sm:$0xff] %v230_v27 }
 0x135   :  { %244 = dma.vmem_to_hbm [thread:$0]  %s240_s12, 128, %s242_s15, [#allocation4]  }
 0x139   :  { %v231_v28 = vpop.f32.mrf.mxu1 }
 0x13a   :  { %440 = dma.done.wait [#allocation4], 128  }
 0x13b   :  { %441 = vsyncadd [#allocation4], 4294967168 }
 0x13c   :  { %249 = vsyncpa [#allocation3], 1 }
 0x13d   :  { %250 = vsyncpa [#allocation6], 1 }
 0x13e   :  { %251 = vsyncpa [#allocation4], 1 }

</bundles_post_ra>
